<compile_context>
chip_gen: v6e
topology: v6e:2x2x1
jax: 0.10.0
libtpu: 0.0.40
codegen_flags: <defaults>
</compile_context>

<pallas_src>
from functools import partial

import numpy as np
import jax
import jax.numpy as jnp
from jax.experimental import pallas as pl
from jax.experimental.pallas import tpu as pltpu

_SMEM = pl.BlockSpec(memory_space=pltpu.MemorySpace.SMEM)
_VMEM = pl.BlockSpec(memory_space=pltpu.MemorySpace.VMEM)
_ANY = pl.BlockSpec(memory_space=pl.ANY)


def _make_delay_fifo_chunk_kernel(delay, num_envs, chunk):
    D, N, Tc = delay, num_envs, chunk
    assert 1 <= Tc <= D and (Tc == 1 or 2 * Tc <= D)

    def kernel(i0_ref, w_ref, buf_in_ref, ans_ref, buf_out_ref, ab_ref, sem):
        i0 = i0_ref[0]                        # uniform per-env index, 0 <= i0 < D
        s_a = jnp.minimum(i0, D - Tc)         # clamped slab-A start
        o = i0 - s_a                          # 0 -> window does not wrap; >0 -> wraps

        # --- read only the coverage slabs of the touched window (pre-image) ----------
        rd_a = pltpu.make_async_copy(buf_in_ref.at[pl.ds(s_a, Tc)],
                                     ab_ref.at[pl.ds(0, Tc)], sem.at[0])
        rd_a.start()

        @pl.when(o > 0)
        def _():                              # wrapped tail lives in HBM rows [0, Tc)
            rd_b = pltpu.make_async_copy(buf_in_ref.at[pl.ds(0, Tc)],
                                         ab_ref.at[pl.ds(Tc, Tc)], sem.at[1])
            rd_b.start()
            rd_b.wait()

        rd_a.wait()

        # --- gather, one slab: ans[t] = buffor[(i0 + t) % D] == AB[o + t] ------------
        ans_ref[...] = ab_ref[pl.ds(o, Tc), :]

        # --- scatter, one slab: window rows := w (uniform column, last write wins) ---
        ab_ref[pl.ds(o, Tc), :] = w_ref[...]

        # --- write back only the touched rows (<= 2 static-size slabs) ---------------
        wr_a = pltpu.make_async_copy(ab_ref.at[pl.ds(0, Tc)],
                                     buf_out_ref.at[pl.ds(s_a, Tc)], sem.at[2])
        wr_a.start()

        @pl.when(o > 0)
        def _():
            wr_b = pltpu.make_async_copy(ab_ref.at[pl.ds(Tc, Tc)],
                                         buf_out_ref.at[pl.ds(0, Tc)], sem.at[3])
            wr_b.start()
            wr_b.wait()

        wr_a.wait()

    return kernel


def _delay_fifo_chunk(w_c, buffor, i0_vec):
    """One pallas_call processing Tc = w_c.shape[0] steps (Tc <= max(1, D // 2))."""
    Tc, N = w_c.shape
    D = buffor.shape[0]
    bytes_accessed = 6 * Tc * N * 4 + 4          # slabs in/out + w in + ans out + i0
    ans, new_buffor = pl.pallas_call(
        _make_delay_fifo_chunk_kernel(D, N, Tc),
        out_shape=(
            jax.ShapeDtypeStruct((Tc, N), jnp.float32),
            jax.ShapeDtypeStruct((D, N), jnp.float32),
        ),
        in_specs=[_SMEM, _VMEM, _ANY],
        out_specs=(_VMEM, _ANY),
        scratch_shapes=[
            pltpu.VMEM((2 * Tc, N), jnp.float32),   # AB staging window
            pltpu.SemaphoreType.DMA((4,)),
        ],
        input_output_aliases={2: 1},                # buffer updated in place in HBM
        cost_estimate=pl.CostEstimate(flops=0, transcendentals=0,
                                      bytes_accessed=bytes_accessed),
    )(i0_vec, w_c, buffor)
    return ans, new_buffor


def delay_fifo_init(delay_time_in_samples, num_envs):
    """State init.  buffor stored (delay, num_envs): delay on sublanes, envs lane-dense."""
    buffor = jnp.zeros((delay_time_in_samples, num_envs), jnp.float32)
    i = jnp.zeros((num_envs,), jnp.int32)
    return buffor, i


@partial(jax.jit, donate_argnums=(1,))
def delay_fifo_forward_steps(xs, buffor, i):
    """Run T = xs.shape[0] forward steps of DelayBufforFIFO.

    xs:     (T, N) float32   per-step module inputs
    buffor: (D, N) float32   delay-line state (donated; updated in place in HBM)
    i:      (N,)   int32     per-env index (uniform by construction)
    Returns (ans (T, N), new_buffor (D, N), new_i (N,)).
    """
    T, N = xs.shape
    D = buffor.shape[0]
    chunk = max(1, D // 2)   # <= D//2 so the wrapped window splits into two disjoint slabs

    # Literal torch `buffor[:, i] = x` with a uniform duplicate index: the surviving value
    # for the whole column is x[t, N-1]; broadcast once into a lane-dense slab.
    # TODO(synk): for per-env FIFO semantics pass xs itself here instead.
    w_all = jnp.broadcast_to(xs[:, N - 1:N].astype(jnp.float32), (T, N))

    i0 = i.astype(jnp.int32)[0]
    ans_parts = []
    for c0 in range(0, T, chunk):            # static unroll: ceil(T / chunk) pallas_calls
        tc = min(chunk, T - c0)
        ans_c, buffor = _delay_fifo_chunk(w_all[c0:c0 + tc], buffor,
                                          jnp.reshape(i0, (1,)))
        ans_parts.append(ans_c)
        i0 = (i0 + tc) % D
    ans = ans_parts[0] if len(ans_parts) == 1 else jnp.concatenate(ans_parts, axis=0)

    new_i = (i.astype(jnp.int32) + T) % D
    return ans, buffor, new_i


def _ref_step(x, buf, i, D):
    """Numpy reference reproducing the literal PyTorch semantics (buf is (N, D))."""
    N = buf.shape[0]
    ans = buf[np.arange(N), i].copy()
    newbuf = buf.copy()
    for k in range(N):                 # sequential -> last k wins on duplicate cols
        newbuf[:, i[k]] = x[k]
    newi = (i + 1) % D
    return ans, newbuf, newi


if __name__ == "__main__":
    num_envs = 8
    delay_time_in_samples = 16
    T = delay_time_in_samples + 3      # > D: exercises wrap + multi-chunk inside one call

    key = jax.random.PRNGKey(0)
    k1, k2 = jax.random.split(key)

    buffor, i = delay_fifo_init(delay_time_in_samples, num_envs)

    # Numpy mirror of the literal torch semantics, in the module's (N, D) layout.
    buf_np = np.zeros((num_envs, delay_time_in_samples), dtype=np.float32)
    i_np = np.zeros((num_envs,), dtype=np.int64)

    ans = None
    for kk in (k1, k2):                # two batched calls: state carry + donation
        xs = jax.random.normal(kk, (T, num_envs), dtype=jnp.float32)
        ans, buffor, i = delay_fifo_forward_steps(xs, buffor, i)
        jax.block_until_ready((ans, buffor, i))

        xs_np = np.asarray(xs)
        ans_np = np.asarray(ans)
        for t in range(T):
            a_ref, buf_np, i_np = _ref_step(xs_np[t], buf_np, i_np,
                                            delay_time_in_samples)
            np.testing.assert_allclose(ans_np[t], a_ref, rtol=1e-6, atol=1e-6)
        np.testing.assert_allclose(np.asarray(buffor).T, buf_np,
                                   rtol=1e-6, atol=1e-6)
        np.testing.assert_array_equal(np.asarray(i), i_np.astype(np.int32))

    jax.block_until_ready(ans)
    print("KERNEL_OK")
</pallas_src>

<mosaic_0001>
module attributes {stable_mosaic.version = 11 : i64} {
  func.func @kernel(%arg0: memref<1xi32, #tpu.memory_space<smem>>, %arg1: memref<8x8xf32, #tpu.memory_space<vmem>>, %arg2: memref<16x8xf32, #tpu.memory_space<any>>, %arg3: memref<8x8xf32, #tpu.memory_space<vmem>>, %arg4: memref<16x8xf32, #tpu.memory_space<any>>, %arg5: memref<16x8xf32, #tpu.memory_space<vmem>>, %arg6: memref<4x!tpu.dma_semaphore, #tpu.memory_space<semaphore_mem>>) attributes {dimension_semantics = [], scalar_prefetch = 0 : i64, scratch_operands = 2 : i64, tpu.core_type = #tpu.core_type<tc>} {
    %c0 = arith.constant 0 : index
    %0 = memref.load %arg0[%c0] : memref<1xi32, #tpu.memory_space<smem>>
    %c8_i32 = arith.constant 8 : i32
    %1 = arith.minsi %0, %c8_i32 : i32
    %2 = arith.subi %0, %1 : i32
    %c0_i32 = arith.constant 0 : i32
    %c0_i32_0 = arith.constant 0 : i32
    %3 = tpu.memref_slice %arg2[%1, %c0_i32_0] : memref<16x8xf32, #tpu.memory_space<any>> -> memref<8x8xf32, #tpu.memory_space<any>>
    %c0_i32_1 = arith.constant 0 : i32
    %c0_i32_2 = arith.constant 0 : i32
    %4 = tpu.memref_slice %arg5[%c0_i32_1, %c0_i32_2] : memref<16x8xf32, #tpu.memory_space<vmem>> -> memref<8x8xf32, #tpu.memory_space<vmem>>
    %5 = tpu.memref_slice %arg6[%c0_i32] : memref<4x!tpu.dma_semaphore, #tpu.memory_space<semaphore_mem>> -> memref<1x!tpu.dma_semaphore, #tpu.memory_space<semaphore_mem>>
    %6 = tpu.memref_squeeze %5 : memref<1x!tpu.dma_semaphore, #tpu.memory_space<semaphore_mem>> -> memref<!tpu.dma_semaphore, #tpu.memory_space<semaphore_mem>>
    tpu.enqueue_dma source(%3 : memref<8x8xf32, #tpu.memory_space<any>>) target(%4 : memref<8x8xf32, #tpu.memory_space<vmem>>) target_semaphore(%6 : memref<!tpu.dma_semaphore, #tpu.memory_space<semaphore_mem>>)
    %c0_i32_3 = arith.constant 0 : i32
    %7 = arith.cmpi sgt, %2, %c0_i32_3 : i32
    %8 = arith.extui %7 : i1 to i32
    %c0_i32_4 = arith.constant 0 : i32
    %9 = arith.cmpi ne, %8, %c0_i32_4 : i32
    scf.if %9 {
      %c1_i32 = arith.constant 1 : i32
      %c0_i32_24 = arith.constant 0 : i32
      %c0_i32_25 = arith.constant 0 : i32
      %31 = tpu.memref_slice %arg2[%c0_i32_24, %c0_i32_25] : memref<16x8xf32, #tpu.memory_space<any>> -> memref<8x8xf32, #tpu.memory_space<any>>
      %c8_i32_26 = arith.constant 8 : i32
      %c0_i32_27 = arith.constant 0 : i32
      %32 = tpu.memref_slice %arg5[%c8_i32_26, %c0_i32_27] : memref<16x8xf32, #tpu.memory_space<vmem>> -> memref<8x8xf32, #tpu.memory_space<vmem>>
      %33 = tpu.memref_slice %arg6[%c1_i32] : memref<4x!tpu.dma_semaphore, #tpu.memory_space<semaphore_mem>> -> memref<1x!tpu.dma_semaphore, #tpu.memory_space<semaphore_mem>>
      %34 = tpu.memref_squeeze %33 : memref<1x!tpu.dma_semaphore, #tpu.memory_space<semaphore_mem>> -> memref<!tpu.dma_semaphore, #tpu.memory_space<semaphore_mem>>
      tpu.enqueue_dma source(%31 : memref<8x8xf32, #tpu.memory_space<any>>) target(%32 : memref<8x8xf32, #tpu.memory_space<vmem>>) target_semaphore(%34 : memref<!tpu.dma_semaphore, #tpu.memory_space<semaphore_mem>>)
      %c1_i32_28 = arith.constant 1 : i32
      %c0_i32_29 = arith.constant 0 : i32
      %c0_i32_30 = arith.constant 0 : i32
      %35 = tpu.memref_slice %arg2[%c0_i32_29, %c0_i32_30] : memref<16x8xf32, #tpu.memory_space<any>> -> memref<8x8xf32, #tpu.memory_space<any>>
      %c8_i32_31 = arith.constant 8 : i32
      %c0_i32_32 = arith.constant 0 : i32
      %36 = tpu.memref_slice %arg5[%c8_i32_31, %c0_i32_32] : memref<16x8xf32, #tpu.memory_space<vmem>> -> memref<8x8xf32, #tpu.memory_space<vmem>>
      %37 = tpu.memref_slice %arg6[%c1_i32_28] : memref<4x!tpu.dma_semaphore, #tpu.memory_space<semaphore_mem>> -> memref<1x!tpu.dma_semaphore, #tpu.memory_space<semaphore_mem>>
      %38 = tpu.memref_squeeze %37 : memref<1x!tpu.dma_semaphore, #tpu.memory_space<semaphore_mem>> -> memref<!tpu.dma_semaphore, #tpu.memory_space<semaphore_mem>>
      tpu.wait_dma2 semaphore(%38 : memref<!tpu.dma_semaphore, #tpu.memory_space<semaphore_mem>>) src(%35 : memref<8x8xf32, #tpu.memory_space<any>>) dst(%36 : memref<8x8xf32, #tpu.memory_space<vmem>>)
    } else {
    }
    %c0_i32_5 = arith.constant 0 : i32
    %c0_i32_6 = arith.constant 0 : i32
    %10 = tpu.memref_slice %arg2[%1, %c0_i32_6] : memref<16x8xf32, #tpu.memory_space<any>> -> memref<8x8xf32, #tpu.memory_space<any>>
    %c0_i32_7 = arith.constant 0 : i32
    %c0_i32_8 = arith.constant 0 : i32
    %11 = tpu.memref_slice %arg5[%c0_i32_7, %c0_i32_8] : memref<16x8xf32, #tpu.memory_space<vmem>> -> memref<8x8xf32, #tpu.memory_space<vmem>>
    %12 = tpu.memref_slice %arg6[%c0_i32_5] : memref<4x!tpu.dma_semaphore, #tpu.memory_space<semaphore_mem>> -> memref<1x!tpu.dma_semaphore, #tpu.memory_space<semaphore_mem>>
    %13 = tpu.memref_squeeze %12 : memref<1x!tpu.dma_semaphore, #tpu.memory_space<semaphore_mem>> -> memref<!tpu.dma_semaphore, #tpu.memory_space<semaphore_mem>>
    tpu.wait_dma2 semaphore(%13 : memref<!tpu.dma_semaphore, #tpu.memory_space<semaphore_mem>>) src(%10 : memref<8x8xf32, #tpu.memory_space<any>>) dst(%11 : memref<8x8xf32, #tpu.memory_space<vmem>>)
    %14 = arith.index_cast %2 : i32 to index
    %c0_9 = arith.constant 0 : index
    %15 = vector.load %arg5[%14, %c0_9] : memref<16x8xf32, #tpu.memory_space<vmem>>, vector<8x8xf32>
    %c0_10 = arith.constant 0 : index
    %c0_11 = arith.constant 0 : index
    %16 = vector.load %arg3[%c0_10, %c0_11] : memref<8x8xf32, #tpu.memory_space<vmem>>, vector<8x8xf32>
    tpu.vector_store %arg3[%c0_10, %c0_11], %15 {strides = array<i32>} : memref<8x8xf32, #tpu.memory_space<vmem>>, vector<8x8xf32>,
    %c0_12 = arith.constant 0 : index
    %c0_13 = arith.constant 0 : index
    %17 = vector.load %arg1[%c0_12, %c0_13] : memref<8x8xf32, #tpu.memory_space<vmem>>, vector<8x8xf32>
    %18 = arith.index_cast %2 : i32 to index
    %c0_14 = arith.constant 0 : index
    %19 = vector.load %arg5[%18, %c0_14] : memref<16x8xf32, #tpu.memory_space<vmem>>, vector<8x8xf32>
    tpu.vector_store %arg5[%18, %c0_14], %17 {strides = array<i32>} : memref<16x8xf32, #tpu.memory_space<vmem>>, vector<8x8xf32>,
    %c2_i32 = arith.constant 2 : i32
    %c0_i32_15 = arith.constant 0 : i32
    %c0_i32_16 = arith.constant 0 : i32
    %20 = tpu.memref_slice %arg5[%c0_i32_15, %c0_i32_16] : memref<16x8xf32, #tpu.memory_space<vmem>> -> memref<8x8xf32, #tpu.memory_space<vmem>>
    %c0_i32_17 = arith.constant 0 : i32
    %21 = tpu.memref_slice %arg4[%1, %c0_i32_17] : memref<16x8xf32, #tpu.memory_space<any>> -> memref<8x8xf32, #tpu.memory_space<any>>
    %22 = tpu.memref_slice %arg6[%c2_i32] : memref<4x!tpu.dma_semaphore, #tpu.memory_space<semaphore_mem>> -> memref<1x!tpu.dma_semaphore, #tpu.memory_space<semaphore_mem>>
    %23 = tpu.memref_squeeze %22 : memref<1x!tpu.dma_semaphore, #tpu.memory_space<semaphore_mem>> -> memref<!tpu.dma_semaphore, #tpu.memory_space<semaphore_mem>>
    tpu.enqueue_dma source(%20 : memref<8x8xf32, #tpu.memory_space<vmem>>) target(%21 : memref<8x8xf32, #tpu.memory_space<any>>) target_semaphore(%23 : memref<!tpu.dma_semaphore, #tpu.memory_space<semaphore_mem>>)
    %c0_i32_18 = arith.constant 0 : i32
    %24 = arith.cmpi sgt, %2, %c0_i32_18 : i32
    %25 = arith.extui %24 : i1 to i32
    %c0_i32_19 = arith.constant 0 : i32
    %26 = arith.cmpi ne, %25, %c0_i32_19 : i32
    scf.if %26 {
      %c3_i32 = arith.constant 3 : i32
      %c8_i32_24 = arith.constant 8 : i32
      %c0_i32_25 = arith.constant 0 : i32
      %31 = tpu.memref_slice %arg5[%c8_i32_24, %c0_i32_25] : memref<16x8xf32, #tpu.memory_space<vmem>> -> memref<8x8xf32, #tpu.memory_space<vmem>>
      %c0_i32_26 = arith.constant 0 : i32
      %c0_i32_27 = arith.constant 0 : i32
      %32 = tpu.memref_slice %arg4[%c0_i32_26, %c0_i32_27] : memref<16x8xf32, #tpu.memory_space<any>> -> memref<8x8xf32, #tpu.memory_space<any>>
      %33 = tpu.memref_slice %arg6[%c3_i32] : memref<4x!tpu.dma_semaphore, #tpu.memory_space<semaphore_mem>> -> memref<1x!tpu.dma_semaphore, #tpu.memory_space<semaphore_mem>>
      %34 = tpu.memref_squeeze %33 : memref<1x!tpu.dma_semaphore, #tpu.memory_space<semaphore_mem>> -> memref<!tpu.dma_semaphore, #tpu.memory_space<semaphore_mem>>
      tpu.enqueue_dma source(%31 : memref<8x8xf32, #tpu.memory_space<vmem>>) target(%32 : memref<8x8xf32, #tpu.memory_space<any>>) target_semaphore(%34 : memref<!tpu.dma_semaphore, #tpu.memory_space<semaphore_mem>>)
      %c3_i32_28 = arith.constant 3 : i32
      %c8_i32_29 = arith.constant 8 : i32
      %c0_i32_30 = arith.constant 0 : i32
      %35 = tpu.memref_slice %arg5[%c8_i32_29, %c0_i32_30] : memref<16x8xf32, #tpu.memory_space<vmem>> -> memref<8x8xf32, #tpu.memory_space<vmem>>
      %c0_i32_31 = arith.constant 0 : i32
      %c0_i32_32 = arith.constant 0 : i32
      %36 = tpu.memref_slice %arg4[%c0_i32_31, %c0_i32_32] : memref<16x8xf32, #tpu.memory_space<any>> -> memref<8x8xf32, #tpu.memory_space<any>>
      %37 = tpu.memref_slice %arg6[%c3_i32_28] : memref<4x!tpu.dma_semaphore, #tpu.memory_space<semaphore_mem>> -> memref<1x!tpu.dma_semaphore, #tpu.memory_space<semaphore_mem>>
      %38 = tpu.memref_squeeze %37 : memref<1x!tpu.dma_semaphore, #tpu.memory_space<semaphore_mem>> -> memref<!tpu.dma_semaphore, #tpu.memory_space<semaphore_mem>>
      tpu.wait_dma2 semaphore(%38 : memref<!tpu.dma_semaphore, #tpu.memory_space<semaphore_mem>>) src(%35 : memref<8x8xf32, #tpu.memory_space<vmem>>) dst(%36 : memref<8x8xf32, #tpu.memory_space<any>>)
    } else {
    }
    %c2_i32_20 = arith.constant 2 : i32
    %c0_i32_21 = arith.constant 0 : i32
    %c0_i32_22 = arith.constant 0 : i32
    %27 = tpu.memref_slice %arg5[%c0_i32_21, %c0_i32_22] : memref<16x8xf32, #tpu.memory_space<vmem>> -> memref<8x8xf32, #tpu.memory_space<vmem>>
    %c0_i32_23 = arith.constant 0 : i32
    %28 = tpu.memref_slice %arg4[%1, %c0_i32_23] : memref<16x8xf32, #tpu.memory_space<any>> -> memref<8x8xf32, #tpu.memory_space<any>>
    %29 = tpu.memref_slice %arg6[%c2_i32_20] : memref<4x!tpu.dma_semaphore, #tpu.memory_space<semaphore_mem>> -> memref<1x!tpu.dma_semaphore, #tpu.memory_space<semaphore_mem>>
    %30 = tpu.memref_squeeze %29 : memref<1x!tpu.dma_semaphore, #tpu.memory_space<semaphore_mem>> -> memref<!tpu.dma_semaphore, #tpu.memory_space<semaphore_mem>>
    tpu.wait_dma2 semaphore(%30 : memref<!tpu.dma_semaphore, #tpu.memory_space<semaphore_mem>>) src(%27 : memref<8x8xf32, #tpu.memory_space<vmem>>) dst(%28 : memref<8x8xf32, #tpu.memory_space<any>>)
    return
  }
}

module attributes {stable_mosaic.version = 11 : i64} {
  func.func @kernel(%arg0: memref<1xi32, #tpu.memory_space<smem>>, %arg1: memref<8x8xf32, #tpu.memory_space<vmem>>, %arg2: memref<16x8xf32, #tpu.memory_space<any>>, %arg3: memref<8x8xf32, #tpu.memory_space<vmem>>, %arg4: memref<16x8xf32, #tpu.memory_space<any>>, %arg5: memref<16x8xf32, #tpu.memory_space<vmem>>, %arg6: memref<4x!tpu.dma_semaphore, #tpu.memory_space<semaphore_mem>>) attributes {dimension_semantics = [], scalar_prefetch = 0 : i64, scratch_operands = 2 : i64, tpu.core_type = #tpu.core_type<tc>} {
    %c0 = arith.constant 0 : index
    %0 = memref.load %arg0[%c0] : memref<1xi32, #tpu.memory_space<smem>>
    %c8_i32 = arith.constant 8 : i32
    %1 = arith.minsi %0, %c8_i32 : i32
    %2 = arith.subi %0, %1 : i32
    %c0_i32 = arith.constant 0 : i32
    %c0_i32_0 = arith.constant 0 : i32
    %3 = tpu.memref_slice %arg2[%1, %c0_i32_0] : memref<16x8xf32, #tpu.memory_space<any>> -> memref<8x8xf32, #tpu.memory_space<any>>
    %c0_i32_1 = arith.constant 0 : i32
    %c0_i32_2 = arith.constant 0 : i32
    %4 = tpu.memref_slice %arg5[%c0_i32_1, %c0_i32_2] : memref<16x8xf32, #tpu.memory_space<vmem>> -> memref<8x8xf32, #tpu.memory_space<vmem>>
    %5 = tpu.memref_slice %arg6[%c0_i32] : memref<4x!tpu.dma_semaphore, #tpu.memory_space<semaphore_mem>> -> memref<1x!tpu.dma_semaphore, #tpu.memory_space<semaphore_mem>>
    %6 = tpu.memref_squeeze %5 : memref<1x!tpu.dma_semaphore, #tpu.memory_space<semaphore_mem>> -> memref<!tpu.dma_semaphore, #tpu.memory_space<semaphore_mem>>
    tpu.enqueue_dma source(%3 : memref<8x8xf32, #tpu.memory_space<any>>) target(%4 : memref<8x8xf32, #tpu.memory_space<vmem>>) target_semaphore(%6 : memref<!tpu.dma_semaphore, #tpu.memory_space<semaphore_mem>>)
    %c0_i32_3 = arith.constant 0 : i32
    %7 = arith.cmpi sgt, %2, %c0_i32_3 : i32
    %8 = arith.extui %7 : i1 to i32
    %c0_i32_4 = arith.constant 0 : i32
    %9 = arith.cmpi ne, %8, %c0_i32_4 : i32
    scf.if %9 {
      %c1_i32 = arith.constant 1 : i32
      %c0_i32_24 = arith.constant 0 : i32
      %c0_i32_25 = arith.constant 0 : i32
      %31 = tpu.memref_slice %arg2[%c0_i32_24, %c0_i32_25] : memref<16x8xf32, #tpu.memory_space<any>> -> memref<8x8xf32, #tpu.memory_space<any>>
      %c8_i32_26 = arith.constant 8 : i32
      %c0_i32_27 = arith.constant 0 : i32
      %32 = tpu.memref_slice %arg5[%c8_i32_26, %c0_i32_27] : memref<16x8xf32, #tpu.memory_space<vmem>> -> memref<8x8xf32, #tpu.memory_space<vmem>>
      %33 = tpu.memref_slice %arg6[%c1_i32] : memref<4x!tpu.dma_semaphore, #tpu.memory_space<semaphore_mem>> -> memref<1x!tpu.dma_semaphore, #tpu.memory_space<semaphore_mem>>
      %34 = tpu.memref_squeeze %33 : memref<1x!tpu.dma_semaphore, #tpu.memory_space<semaphore_mem>> -> memref<!tpu.dma_semaphore, #tpu.memory_space<semaphore_mem>>
      tpu.enqueue_dma source(%31 : memref<8x8xf32, #tpu.memory_space<any>>) target(%32 : memref<8x8xf32, #tpu.memory_space<vmem>>) target_semaphore(%34 : memref<!tpu.dma_semaphore, #tpu.memory_space<semaphore_mem>>)
      %c1_i32_28 = arith.constant 1 : i32
      %c0_i32_29 = arith.constant 0 : i32
      %c0_i32_30 = arith.constant 0 : i32
      %35 = tpu.memref_slice %arg2[%c0_i32_29, %c0_i32_30] : memref<16x8xf32, #tpu.memory_space<any>> -> memref<8x8xf32, #tpu.memory_space<any>>
      %c8_i32_31 = arith.constant 8 : i32
      %c0_i32_32 = arith.constant 0 : i32
      %36 = tpu.memref_slice %arg5[%c8_i32_31, %c0_i32_32] : memref<16x8xf32, #tpu.memory_space<vmem>> -> memref<8x8xf32, #tpu.memory_space<vmem>>
      %37 = tpu.memref_slice %arg6[%c1_i32_28] : memref<4x!tpu.dma_semaphore, #tpu.memory_space<semaphore_mem>> -> memref<1x!tpu.dma_semaphore, #tpu.memory_space<semaphore_mem>>
      %38 = tpu.memref_squeeze %37 : memref<1x!tpu.dma_semaphore, #tpu.memory_space<semaphore_mem>> -> memref<!tpu.dma_semaphore, #tpu.memory_space<semaphore_mem>>
      tpu.wait_dma2 semaphore(%38 : memref<!tpu.dma_semaphore, #tpu.memory_space<semaphore_mem>>) src(%35 : memref<8x8xf32, #tpu.memory_space<any>>) dst(%36 : memref<8x8xf32, #tpu.memory_space<vmem>>)
    } else {
    }
    %c0_i32_5 = arith.constant 0 : i32
    %c0_i32_6 = arith.constant 0 : i32
    %10 = tpu.memref_slice %arg2[%1, %c0_i32_6] : memref<16x8xf32, #tpu.memory_space<any>> -> memref<8x8xf32, #tpu.memory_space<any>>
    %c0_i32_7 = arith.constant 0 : i32
    %c0_i32_8 = arith.constant 0 : i32
    %11 = tpu.memref_slice %arg5[%c0_i32_7, %c0_i32_8] : memref<16x8xf32, #tpu.memory_space<vmem>> -> memref<8x8xf32, #tpu.memory_space<vmem>>
    %12 = tpu.memref_slice %arg6[%c0_i32_5] : memref<4x!tpu.dma_semaphore, #tpu.memory_space<semaphore_mem>> -> memref<1x!tpu.dma_semaphore, #tpu.memory_space<semaphore_mem>>
    %13 = tpu.memref_squeeze %12 : memref<1x!tpu.dma_semaphore, #tpu.memory_space<semaphore_mem>> -> memref<!tpu.dma_semaphore, #tpu.memory_space<semaphore_mem>>
    tpu.wait_dma2 semaphore(%13 : memref<!tpu.dma_semaphore, #tpu.memory_space<semaphore_mem>>) src(%10 : memref<8x8xf32, #tpu.memory_space<any>>) dst(%11 : memref<8x8xf32, #tpu.memory_space<vmem>>)
    %14 = arith.index_cast %2 : i32 to index
    %c0_9 = arith.constant 0 : index
    %15 = vector.load %arg5[%14, %c0_9] : memref<16x8xf32, #tpu.memory_space<vmem>>, vector<8x8xf32>
    %c0_10 = arith.constant 0 : index
    %c0_11 = arith.constant 0 : index
    %16 = vector.load %arg3[%c0_10, %c0_11] : memref<8x8xf32, #tpu.memory_space<vmem>>, vector<8x8xf32>
    tpu.vector_store %arg3[%c0_10, %c0_11], %15 {strides = array<i32>} : memref<8x8xf32, #tpu.memory_space<vmem>>, vector<8x8xf32>,
    %c0_12 = arith.constant 0 : index
    %c0_13 = arith.constant 0 : index
    %17 = vector.load %arg1[%c0_12, %c0_13] : memref<8x8xf32, #tpu.memory_space<vmem>>, vector<8x8xf32>
    %18 = arith.index_cast %2 : i32 to index
    %c0_14 = arith.constant 0 : index
    %19 = vector.load %arg5[%18, %c0_14] : memref<16x8xf32, #tpu.memory_space<vmem>>, vector<8x8xf32>
    tpu.vector_store %arg5[%18, %c0_14], %17 {strides = array<i32>} : memref<16x8xf32, #tpu.memory_space<vmem>>, vector<8x8xf32>,
    %c2_i32 = arith.constant 2 : i32
    %c0_i32_15 = arith.constant 0 : i32
    %c0_i32_16 = arith.constant 0 : i32
    %20 = tpu.memref_slice %arg5[%c0_i32_15, %c0_i32_16] : memref<16x8xf32, #tpu.memory_space<vmem>> -> memref<8x8xf32, #tpu.memory_space<vmem>>
    %c0_i32_17 = arith.constant 0 : i32
    %21 = tpu.memref_slice %arg4[%1, %c0_i32_17] : memref<16x8xf32, #tpu.memory_space<any>> -> memref<8x8xf32, #tpu.memory_space<any>>
    %22 = tpu.memref_slice %arg6[%c2_i32] : memref<4x!tpu.dma_semaphore, #tpu.memory_space<semaphore_mem>> -> memref<1x!tpu.dma_semaphore, #tpu.memory_space<semaphore_mem>>
    %23 = tpu.memref_squeeze %22 : memref<1x!tpu.dma_semaphore, #tpu.memory_space<semaphore_mem>> -> memref<!tpu.dma_semaphore, #tpu.memory_space<semaphore_mem>>
    tpu.enqueue_dma source(%20 : memref<8x8xf32, #tpu.memory_space<vmem>>) target(%21 : memref<8x8xf32, #tpu.memory_space<any>>) target_semaphore(%23 : memref<!tpu.dma_semaphore, #tpu.memory_space<semaphore_mem>>)
    %c0_i32_18 = arith.constant 0 : i32
    %24 = arith.cmpi sgt, %2, %c0_i32_18 : i32
    %25 = arith.extui %24 : i1 to i32
    %c0_i32_19 = arith.constant 0 : i32
    %26 = arith.cmpi ne, %25, %c0_i32_19 : i32
    scf.if %26 {
      %c3_i32 = arith.constant 3 : i32
      %c8_i32_24 = arith.constant 8 : i32
      %c0_i32_25 = arith.constant 0 : i32
      %31 = tpu.memref_slice %arg5[%c8_i32_24, %c0_i32_25] : memref<16x8xf32, #tpu.memory_space<vmem>> -> memref<8x8xf32, #tpu.memory_space<vmem>>
      %c0_i32_26 = arith.constant 0 : i32
      %c0_i32_27 = arith.constant 0 : i32
      %32 = tpu.memref_slice %arg4[%c0_i32_26, %c0_i32_27] : memref<16x8xf32, #tpu.memory_space<any>> -> memref<8x8xf32, #tpu.memory_space<any>>
      %33 = tpu.memref_slice %arg6[%c3_i32] : memref<4x!tpu.dma_semaphore, #tpu.memory_space<semaphore_mem>> -> memref<1x!tpu.dma_semaphore, #tpu.memory_space<semaphore_mem>>
      %34 = tpu.memref_squeeze %33 : memref<1x!tpu.dma_semaphore, #tpu.memory_space<semaphore_mem>> -> memref<!tpu.dma_semaphore, #tpu.memory_space<semaphore_mem>>
      tpu.enqueue_dma source(%31 : memref<8x8xf32, #tpu.memory_space<vmem>>) target(%32 : memref<8x8xf32, #tpu.memory_space<any>>) target_semaphore(%34 : memref<!tpu.dma_semaphore, #tpu.memory_space<semaphore_mem>>)
      %c3_i32_28 = arith.constant 3 : i32
      %c8_i32_29 = arith.constant 8 : i32
      %c0_i32_30 = arith.constant 0 : i32
      %35 = tpu.memref_slice %arg5[%c8_i32_29, %c0_i32_30] : memref<16x8xf32, #tpu.memory_space<vmem>> -> memref<8x8xf32, #tpu.memory_space<vmem>>
      %c0_i32_31 = arith.constant 0 : i32
      %c0_i32_32 = arith.constant 0 : i32
      %36 = tpu.memref_slice %arg4[%c0_i32_31, %c0_i32_32] : memref<16x8xf32, #tpu.memory_space<any>> -> memref<8x8xf32, #tpu.memory_space<any>>
      %37 = tpu.memref_slice %arg6[%c3_i32_28] : memref<4x!tpu.dma_semaphore, #tpu.memory_space<semaphore_mem>> -> memref<1x!tpu.dma_semaphore, #tpu.memory_space<semaphore_mem>>
      %38 = tpu.memref_squeeze %37 : memref<1x!tpu.dma_semaphore, #tpu.memory_space<semaphore_mem>> -> memref<!tpu.dma_semaphore, #tpu.memory_space<semaphore_mem>>
      tpu.wait_dma2 semaphore(%38 : memref<!tpu.dma_semaphore, #tpu.memory_space<semaphore_mem>>) src(%35 : memref<8x8xf32, #tpu.memory_space<vmem>>) dst(%36 : memref<8x8xf32, #tpu.memory_space<any>>)
    } else {
    }
    %c2_i32_20 = arith.constant 2 : i32
    %c0_i32_21 = arith.constant 0 : i32
    %c0_i32_22 = arith.constant 0 : i32
    %27 = tpu.memref_slice %arg5[%c0_i32_21, %c0_i32_22] : memref<16x8xf32, #tpu.memory_space<vmem>> -> memref<8x8xf32, #tpu.memory_space<vmem>>
    %c0_i32_23 = arith.constant 0 : i32
    %28 = tpu.memref_slice %arg4[%1, %c0_i32_23] : memref<16x8xf32, #tpu.memory_space<any>> -> memref<8x8xf32, #tpu.memory_space<any>>
    %29 = tpu.memref_slice %arg6[%c2_i32_20] : memref<4x!tpu.dma_semaphore, #tpu.memory_space<semaphore_mem>> -> memref<1x!tpu.dma_semaphore, #tpu.memory_space<semaphore_mem>>
    %30 = tpu.memref_squeeze %29 : memref<1x!tpu.dma_semaphore, #tpu.memory_space<semaphore_mem>> -> memref<!tpu.dma_semaphore, #tpu.memory_space<semaphore_mem>>
    tpu.wait_dma2 semaphore(%30 : memref<!tpu.dma_semaphore, #tpu.memory_space<semaphore_mem>>) src(%27 : memref<8x8xf32, #tpu.memory_space<vmem>>) dst(%28 : memref<8x8xf32, #tpu.memory_space<any>>)
    return
  }
}

module attributes {stable_mosaic.version = 11 : i64} {
  func.func @kernel(%arg0: memref<1xi32, #tpu.memory_space<smem>>, %arg1: memref<3x8xf32, #tpu.memory_space<vmem>>, %arg2: memref<16x8xf32, #tpu.memory_space<any>>, %arg3: memref<3x8xf32, #tpu.memory_space<vmem>>, %arg4: memref<16x8xf32, #tpu.memory_space<any>>, %arg5: memref<6x8xf32, #tpu.memory_space<vmem>>, %arg6: memref<4x!tpu.dma_semaphore, #tpu.memory_space<semaphore_mem>>) attributes {dimension_semantics = [], scalar_prefetch = 0 : i64, scratch_operands = 2 : i64, tpu.core_type = #tpu.core_type<tc>} {
    %c0 = arith.constant 0 : index
    %0 = memref.load %arg0[%c0] : memref<1xi32, #tpu.memory_space<smem>>
    %c13_i32 = arith.constant 13 : i32
    %1 = arith.minsi %0, %c13_i32 : i32
    %2 = arith.subi %0, %1 : i32
    %c0_i32 = arith.constant 0 : i32
    %c0_i32_0 = arith.constant 0 : i32
    %3 = tpu.memref_slice %arg2[%1, %c0_i32_0] : memref<16x8xf32, #tpu.memory_space<any>> -> memref<3x8xf32, #tpu.memory_space<any>>
    %c0_i32_1 = arith.constant 0 : i32
    %c0_i32_2 = arith.constant 0 : i32
    %4 = tpu.memref_slice %arg5[%c0_i32_1, %c0_i32_2] : memref<6x8xf32, #tpu.memory_space<vmem>> -> memref<3x8xf32, #tpu.memory_space<vmem>>
    %5 = tpu.memref_slice %arg6[%c0_i32] : memref<4x!tpu.dma_semaphore, #tpu.memory_space<semaphore_mem>> -> memref<1x!tpu.dma_semaphore, #tpu.memory_space<semaphore_mem>>
    %6 = tpu.memref_squeeze %5 : memref<1x!tpu.dma_semaphore, #tpu.memory_space<semaphore_mem>> -> memref<!tpu.dma_semaphore, #tpu.memory_space<semaphore_mem>>
    tpu.enqueue_dma source(%3 : memref<3x8xf32, #tpu.memory_space<any>>) target(%4 : memref<3x8xf32, #tpu.memory_space<vmem>>) target_semaphore(%6 : memref<!tpu.dma_semaphore, #tpu.memory_space<semaphore_mem>>)
    %c0_i32_3 = arith.constant 0 : i32
    %7 = arith.cmpi sgt, %2, %c0_i32_3 : i32
    %8 = arith.extui %7 : i1 to i32
    %c0_i32_4 = arith.constant 0 : i32
    %9 = arith.cmpi ne, %8, %c0_i32_4 : i32
    scf.if %9 {
      %c1_i32 = arith.constant 1 : i32
      %c0_i32_24 = arith.constant 0 : i32
      %c0_i32_25 = arith.constant 0 : i32
      %31 = tpu.memref_slice %arg2[%c0_i32_24, %c0_i32_25] : memref<16x8xf32, #tpu.memory_space<any>> -> memref<3x8xf32, #tpu.memory_space<any>>
      %c3_i32 = arith.constant 3 : i32
      %c0_i32_26 = arith.constant 0 : i32
      %32 = tpu.memref_slice %arg5[%c3_i32, %c0_i32_26] : memref<6x8xf32, #tpu.memory_space<vmem>> -> memref<3x8xf32, #tpu.memory_space<vmem>>
      %33 = tpu.memref_slice %arg6[%c1_i32] : memref<4x!tpu.dma_semaphore, #tpu.memory_space<semaphore_mem>> -> memref<1x!tpu.dma_semaphore, #tpu.memory_space<semaphore_mem>>
      %34 = tpu.memref_squeeze %33 : memref<1x!tpu.dma_semaphore, #tpu.memory_space<semaphore_mem>> -> memref<!tpu.dma_semaphore, #tpu.memory_space<semaphore_mem>>
      tpu.enqueue_dma source(%31 : memref<3x8xf32, #tpu.memory_space<any>>) target(%32 : memref<3x8xf32, #tpu.memory_space<vmem>>) target_semaphore(%34 : memref<!tpu.dma_semaphore, #tpu.memory_space<semaphore_mem>>)
      %c1_i32_27 = arith.constant 1 : i32
      %c0_i32_28 = arith.constant 0 : i32
      %c0_i32_29 = arith.constant 0 : i32
      %35 = tpu.memref_slice %arg2[%c0_i32_28, %c0_i32_29] : memref<16x8xf32, #tpu.memory_space<any>> -> memref<3x8xf32, #tpu.memory_space<any>>
      %c3_i32_30 = arith.constant 3 : i32
      %c0_i32_31 = arith.constant 0 : i32
      %36 = tpu.memref_slice %arg5[%c3_i32_30, %c0_i32_31] : memref<6x8xf32, #tpu.memory_space<vmem>> -> memref<3x8xf32, #tpu.memory_space<vmem>>
      %37 = tpu.memref_slice %arg6[%c1_i32_27] : memref<4x!tpu.dma_semaphore, #tpu.memory_space<semaphore_mem>> -> memref<1x!tpu.dma_semaphore, #tpu.memory_space<semaphore_mem>>
      %38 = tpu.memref_squeeze %37 : memref<1x!tpu.dma_semaphore, #tpu.memory_space<semaphore_mem>> -> memref<!tpu.dma_semaphore, #tpu.memory_space<semaphore_mem>>
      tpu.wait_dma2 semaphore(%38 : memref<!tpu.dma_semaphore, #tpu.memory_space<semaphore_mem>>) src(%35 : memref<3x8xf32, #tpu.memory_space<any>>) dst(%36 : memref<3x8xf32, #tpu.memory_space<vmem>>)
    } else {
    }
    %c0_i32_5 = arith.constant 0 : i32
    %c0_i32_6 = arith.constant 0 : i32
    %10 = tpu.memref_slice %arg2[%1, %c0_i32_6] : memref<16x8xf32, #tpu.memory_space<any>> -> memref<3x8xf32, #tpu.memory_space<any>>
    %c0_i32_7 = arith.constant 0 : i32
    %c0_i32_8 = arith.constant 0 : i32
    %11 = tpu.memref_slice %arg5[%c0_i32_7, %c0_i32_8] : memref<6x8xf32, #tpu.memory_space<vmem>> -> memref<3x8xf32, #tpu.memory_space<vmem>>
    %12 = tpu.memref_slice %arg6[%c0_i32_5] : memref<4x!tpu.dma_semaphore, #tpu.memory_space<semaphore_mem>> -> memref<1x!tpu.dma_semaphore, #tpu.memory_space<semaphore_mem>>
    %13 = tpu.memref_squeeze %12 : memref<1x!tpu.dma_semaphore, #tpu.memory_space<semaphore_mem>> -> memref<!tpu.dma_semaphore, #tpu.memory_space<semaphore_mem>>
    tpu.wait_dma2 semaphore(%13 : memref<!tpu.dma_semaphore, #tpu.memory_space<semaphore_mem>>) src(%10 : memref<3x8xf32, #tpu.memory_space<any>>) dst(%11 : memref<3x8xf32, #tpu.memory_space<vmem>>)
    %14 = arith.index_cast %2 : i32 to index
    %c0_9 = arith.constant 0 : index
    %15 = vector.load %arg5[%14, %c0_9] : memref<6x8xf32, #tpu.memory_space<vmem>>, vector<3x8xf32>
    %c0_10 = arith.constant 0 : index
    %c0_11 = arith.constant 0 : index
    %16 = vector.load %arg3[%c0_10, %c0_11] : memref<3x8xf32, #tpu.memory_space<vmem>>, vector<3x8xf32>
    tpu.vector_store %arg3[%c0_10, %c0_11], %15 {strides = array<i32>} : memref<3x8xf32, #tpu.memory_space<vmem>>, vector<3x8xf32>,
    %c0_12 = arith.constant 0 : index
    %c0_13 = arith.constant 0 : index
    %17 = vector.load %arg1[%c0_12, %c0_13] : memref<3x8xf32, #tpu.memory_space<vmem>>, vector<3x8xf32>
    %18 = arith.index_cast %2 : i32 to index
    %c0_14 = arith.constant 0 : index
    %19 = vector.load %arg5[%18, %c0_14] : memref<6x8xf32, #tpu.memory_space<vmem>>, vector<3x8xf32>
    tpu.vector_store %arg5[%18, %c0_14], %17 {strides = array<i32>} : memref<6x8xf32, #tpu.memory_space<vmem>>, vector<3x8xf32>,
    %c2_i32 = arith.constant 2 : i32
    %c0_i32_15 = arith.constant 0 : i32
    %c0_i32_16 = arith.constant 0 : i32
    %20 = tpu.memref_slice %arg5[%c0_i32_15, %c0_i32_16] : memref<6x8xf32, #tpu.memory_space<vmem>> -> memref<3x8xf32, #tpu.memory_space<vmem>>
    %c0_i32_17 = arith.constant 0 : i32
    %21 = tpu.memref_slice %arg4[%1, %c0_i32_17] : memref<16x8xf32, #tpu.memory_space<any>> -> memref<3x8xf32, #tpu.memory_space<any>>
    %22 = tpu.memref_slice %arg6[%c2_i32] : memref<4x!tpu.dma_semaphore, #tpu.memory_space<semaphore_mem>> -> memref<1x!tpu.dma_semaphore, #tpu.memory_space<semaphore_mem>>
    %23 = tpu.memref_squeeze %22 : memref<1x!tpu.dma_semaphore, #tpu.memory_space<semaphore_mem>> -> memref<!tpu.dma_semaphore, #tpu.memory_space<semaphore_mem>>
    tpu.enqueue_dma source(%20 : memref<3x8xf32, #tpu.memory_space<vmem>>) target(%21 : memref<3x8xf32, #tpu.memory_space<any>>) target_semaphore(%23 : memref<!tpu.dma_semaphore, #tpu.memory_space<semaphore_mem>>)
    %c0_i32_18 = arith.constant 0 : i32
    %24 = arith.cmpi sgt, %2, %c0_i32_18 : i32
    %25 = arith.extui %24 : i1 to i32
    %c0_i32_19 = arith.constant 0 : i32
    %26 = arith.cmpi ne, %25, %c0_i32_19 : i32
    scf.if %26 {
      %c3_i32 = arith.constant 3 : i32
      %c3_i32_24 = arith.constant 3 : i32
      %c0_i32_25 = arith.constant 0 : i32
      %31 = tpu.memref_slice %arg5[%c3_i32_24, %c0_i32_25] : memref<6x8xf32, #tpu.memory_space<vmem>> -> memref<3x8xf32, #tpu.memory_space<vmem>>
      %c0_i32_26 = arith.constant 0 : i32
      %c0_i32_27 = arith.constant 0 : i32
      %32 = tpu.memref_slice %arg4[%c0_i32_26, %c0_i32_27] : memref<16x8xf32, #tpu.memory_space<any>> -> memref<3x8xf32, #tpu.memory_space<any>>
      %33 = tpu.memref_slice %arg6[%c3_i32] : memref<4x!tpu.dma_semaphore, #tpu.memory_space<semaphore_mem>> -> memref<1x!tpu.dma_semaphore, #tpu.memory_space<semaphore_mem>>
      %34 = tpu.memref_squeeze %33 : memref<1x!tpu.dma_semaphore, #tpu.memory_space<semaphore_mem>> -> memref<!tpu.dma_semaphore, #tpu.memory_space<semaphore_mem>>
      tpu.enqueue_dma source(%31 : memref<3x8xf32, #tpu.memory_space<vmem>>) target(%32 : memref<3x8xf32, #tpu.memory_space<any>>) target_semaphore(%34 : memref<!tpu.dma_semaphore, #tpu.memory_space<semaphore_mem>>)
      %c3_i32_28 = arith.constant 3 : i32
      %c3_i32_29 = arith.constant 3 : i32
      %c0_i32_30 = arith.constant 0 : i32
      %35 = tpu.memref_slice %arg5[%c3_i32_29, %c0_i32_30] : memref<6x8xf32, #tpu.memory_space<vmem>> -> memref<3x8xf32, #tpu.memory_space<vmem>>
      %c0_i32_31 = arith.constant 0 : i32
      %c0_i32_32 = arith.constant 0 : i32
      %36 = tpu.memref_slice %arg4[%c0_i32_31, %c0_i32_32] : memref<16x8xf32, #tpu.memory_space<any>> -> memref<3x8xf32, #tpu.memory_space<any>>
      %37 = tpu.memref_slice %arg6[%c3_i32_28] : memref<4x!tpu.dma_semaphore, #tpu.memory_space<semaphore_mem>> -> memref<1x!tpu.dma_semaphore, #tpu.memory_space<semaphore_mem>>
      %38 = tpu.memref_squeeze %37 : memref<1x!tpu.dma_semaphore, #tpu.memory_space<semaphore_mem>> -> memref<!tpu.dma_semaphore, #tpu.memory_space<semaphore_mem>>
      tpu.wait_dma2 semaphore(%38 : memref<!tpu.dma_semaphore, #tpu.memory_space<semaphore_mem>>) src(%35 : memref<3x8xf32, #tpu.memory_space<vmem>>) dst(%36 : memref<3x8xf32, #tpu.memory_space<any>>)
    } else {
    }
    %c2_i32_20 = arith.constant 2 : i32
    %c0_i32_21 = arith.constant 0 : i32
    %c0_i32_22 = arith.constant 0 : i32
    %27 = tpu.memref_slice %arg5[%c0_i32_21, %c0_i32_22] : memref<6x8xf32, #tpu.memory_space<vmem>> -> memref<3x8xf32, #tpu.memory_space<vmem>>
    %c0_i32_23 = arith.constant 0 : i32
    %28 = tpu.memref_slice %arg4[%1, %c0_i32_23] : memref<16x8xf32, #tpu.memory_space<any>> -> memref<3x8xf32, #tpu.memory_space<any>>
    %29 = tpu.memref_slice %arg6[%c2_i32_20] : memref<4x!tpu.dma_semaphore, #tpu.memory_space<semaphore_mem>> -> memref<1x!tpu.dma_semaphore, #tpu.memory_space<semaphore_mem>>
    %30 = tpu.memref_squeeze %29 : memref<1x!tpu.dma_semaphore, #tpu.memory_space<semaphore_mem>> -> memref<!tpu.dma_semaphore, #tpu.memory_space<semaphore_mem>>
    tpu.wait_dma2 semaphore(%30 : memref<!tpu.dma_semaphore, #tpu.memory_space<semaphore_mem>>) src(%27 : memref<3x8xf32, #tpu.memory_space<vmem>>) dst(%28 : memref<3x8xf32, #tpu.memory_space<any>>)
    return
  }
}

</mosaic_0001>

<bundles_post_ra>
// kernel: delay_fifo_forward_steps.4
= control target key start
LH: loop header
LB: loop body
LE: loop exit
PB: predicated region body
PF: predicated region fallthrough
CT: control target
= control target key end

     0   :  { %s355_s0 = inlined_call_operand.<no memory space> [shape: s32[1], index: 0, kind: input, shape index: {}]   ;;  %s356_s1 = inlined_call_operand.vmem [shape: f32[8,8], index: 1, kind: input, shape index: {}]   ;;  %s357_s3 = inlined_call_operand.vmem [shape: f32[8,8], index: 3, kind: output, shape index: {0}]   ;;  %s358_s4 = inlined_call_operand.vmem [shape: f32[16,8], index: 4, kind: output, shape index: {1}, may-alias: {2,4}]   ;;  %s359_s2 = inlined_call_operand.vmem [shape: f32[16,8], index: 2, kind: input, shape index: {}, may-alias: {2,4}]  }
   0x1   :  { %p16_p0 = scmp.lt.s32.totalorder %s355_s0, 8 }
   0x3   :  { %s17_s19 = scalar_select %p16_p0, %s355_s0, 8 }
   0x5   :  { %s18_s22 = ssub.s32 %s355_s0, %s17_s19  ;;  %s19_s25 = scalar_lea.vmem %s359_s2, %s17_s19 }
   0x6   :  { %v53_v0 = vld [vmem:[%s19_s25] sm:$0xff] }
   0x7   :  { %54 = vst [vmem:[#allocation2] sm:$0xff] %v53_v0 }
   0x8   :  { %62 = vsyncadd [#allocation3], 128  ;;  %p287_p1 = scmp.le.s32.totalorder %s18_s22, 0 }
   0xa   :  { %66 = sbr.rel (%p287_p1) target bundleno = 20 (0x14), region = 47 }
   0xf   :  { %v102_v1 = vld [vmem:[%s359_s2] sm:$0xff] }
  0x10   :  { %103 = vst [vmem:[#allocation2 + $0x8] sm:$0xff] %v102_v1 }
  0x11   :  { %111 = vsyncadd [#allocation3 + $0x1], 128 }
  0x12   :  { %293 = dma.done.wait [#allocation3 + $0x1], 128 }
  0x13   :  { %294 = vsyncadd [#allocation3 + $0x1], 4294967168 }
  0x14 PF:  { %295 = dma.done.wait [#allocation3], 128 }
  0x15   :  { %296 = vsyncadd [#allocation3], 4294967168  ;;  %vm120_vm0 = vcmask 64512   ;;  %s118_s0 = scalar_lea.vmem [#allocation2], %s18_s22  ;;  %v122_v3 = vld [vmem:[%s356_s1] sm:$0xff]  ;;  %s124_s7 = scalar_lea.vmem %s358_s4, %s17_s19 }
  0x17   :  { %v119_v2 = vld [vmem:[%s118_s0] sm:$0xff] }
  0x18   :  { %123 = vst.msk [vmem:[%s118_s0] sm:$0xff] %vm120_vm0, %v122_v3  ;;  %121 = vst.msk [vmem:[%s357_s3] sm:$0xff] %vm120_vm0, %v119_v2 }
  0x1f   :  { %v159_v4 = vld [vmem:[#allocation2] sm:$0xff] }
  0x20   :  { %160 = vst [vmem:[%s124_s7] sm:$0xff] %v159_v4 }
  0x21   :  { %168 = vsyncadd [#allocation3 + $0x2], 128  ;;  %171 = sbr.rel (%p287_p1) target bundleno = 43 (0x2b), region = 119 }
  0x26   :  { %v207_v5 = vld [vmem:[#allocation2 + $0x8] sm:$0xff] }
  0x27   :  { %208 = vst [vmem:[%s358_s4] sm:$0xff] %v207_v5 }
  0x28   :  { %216 = vsyncadd [#allocation3 + $0x3], 128 }
  0x29   :  { %297 = dma.done.wait [#allocation3 + $0x3], 128 }
  0x2a   :  { %298 = vsyncadd [#allocation3 + $0x3], 4294967168 }
  0x2b PF:  { %299 = dma.done.wait [#allocation3 + $0x2], 128 }
  0x2c   :  { %300 = vsyncadd [#allocation3 + $0x2], 4294967168 }
  0x2d   :  { %225 = vsyncmov [#allocation3] }
  0x30   :  { %s226_s1 = vpop.sfrf %225 }
  0x31   :  { %p289_p2 = scmp.ne.s32.totalorder %s226_s1, 0 }
  0x33   :  { %230 = shalt.err (%p289_p2)  }
  0x34   :  { %232 = vsyncmov [#allocation3 + $0x1] }
  0x37   :  { %s233_s3 = vpop.sfrf %232 }
  0x38   :  { %p290_p3 = scmp.ne.s32.totalorder %s233_s3, 0 }
  0x3a   :  { %237 = shalt.err (%p290_p3)  }
  0x3b   :  { %239 = vsyncmov [#allocation3 + $0x2] }
  0x3e   :  { %s240_s10 = vpop.sfrf %239 }
  0x3f   :  { %p291_p4 = scmp.ne.s32.totalorder %s240_s10, 0 }
  0x41   :  { %244 = shalt.err (%p291_p4)  }
  0x42   :  { %246 = vsyncmov [#allocation3 + $0x3] }
  0x45   :  { %s247_s4 = vpop.sfrf %246 }
  0x46   :  { %p292_p5 = scmp.ne.s32.totalorder %s247_s4, 0 }
  0x48   :  { %251 = shalt.err (%p292_p5)  }

// kernel: delay_fifo_forward_steps.3
= control target key start
LH: loop header
LB: loop body
LE: loop exit
PB: predicated region body
PF: predicated region fallthrough
CT: control target
= control target key end

     0   :  { %s355_s0 = inlined_call_operand.<no memory space> [shape: s32[1], index: 0, kind: input, shape index: {}]   ;;  %s356_s1 = inlined_call_operand.vmem [shape: f32[8,8], index: 1, kind: input, shape index: {}]   ;;  %s357_s3 = inlined_call_operand.vmem [shape: f32[8,8], index: 3, kind: output, shape index: {0}]   ;;  %s358_s4 = inlined_call_operand.vmem [shape: f32[16,8], index: 4, kind: output, shape index: {1}, may-alias: {2,4}]   ;;  %s359_s2 = inlined_call_operand.vmem [shape: f32[16,8], index: 2, kind: input, shape index: {}, may-alias: {2,4}]  }
   0x1   :  { %p16_p0 = scmp.lt.s32.totalorder %s355_s0, 8 }
   0x3   :  { %s17_s19 = scalar_select %p16_p0, %s355_s0, 8 }
   0x5   :  { %s18_s22 = ssub.s32 %s355_s0, %s17_s19  ;;  %s19_s25 = scalar_lea.vmem %s359_s2, %s17_s19 }
   0x6   :  { %v53_v0 = vld [vmem:[%s19_s25] sm:$0xff] }
   0x7   :  { %54 = vst [vmem:[#allocation2] sm:$0xff] %v53_v0 }
   0x8   :  { %62 = vsyncadd [#allocation3], 128  ;;  %p287_p1 = scmp.le.s32.totalorder %s18_s22, 0 }
   0xa   :  { %66 = sbr.rel (%p287_p1) target bundleno = 20 (0x14), region = 47 }
   0xf   :  { %v102_v1 = vld [vmem:[%s359_s2] sm:$0xff] }
  0x10   :  { %103 = vst [vmem:[#allocation2 + $0x8] sm:$0xff] %v102_v1 }
  0x11   :  { %111 = vsyncadd [#allocation3 + $0x1], 128 }
  0x12   :  { %293 = dma.done.wait [#allocation3 + $0x1], 128 }
  0x13   :  { %294 = vsyncadd [#allocation3 + $0x1], 4294967168 }
  0x14 PF:  { %295 = dma.done.wait [#allocation3], 128 }
  0x15   :  { %296 = vsyncadd [#allocation3], 4294967168  ;;  %vm120_vm0 = vcmask 64512   ;;  %s118_s0 = scalar_lea.vmem [#allocation2], %s18_s22  ;;  %v122_v3 = vld [vmem:[%s356_s1] sm:$0xff]  ;;  %s124_s7 = scalar_lea.vmem %s358_s4, %s17_s19 }
  0x17   :  { %v119_v2 = vld [vmem:[%s118_s0] sm:$0xff] }
  0x18   :  { %123 = vst.msk [vmem:[%s118_s0] sm:$0xff] %vm120_vm0, %v122_v3  ;;  %121 = vst.msk [vmem:[%s357_s3] sm:$0xff] %vm120_vm0, %v119_v2 }
  0x1f   :  { %v159_v4 = vld [vmem:[#allocation2] sm:$0xff] }
  0x20   :  { %160 = vst [vmem:[%s124_s7] sm:$0xff] %v159_v4 }
  0x21   :  { %168 = vsyncadd [#allocation3 + $0x2], 128  ;;  %171 = sbr.rel (%p287_p1) target bundleno = 43 (0x2b), region = 119 }
  0x26   :  { %v207_v5 = vld [vmem:[#allocation2 + $0x8] sm:$0xff] }
  0x27   :  { %208 = vst [vmem:[%s358_s4] sm:$0xff] %v207_v5 }
  0x28   :  { %216 = vsyncadd [#allocation3 + $0x3], 128 }
  0x29   :  { %297 = dma.done.wait [#allocation3 + $0x3], 128 }
  0x2a   :  { %298 = vsyncadd [#allocation3 + $0x3], 4294967168 }
  0x2b PF:  { %299 = dma.done.wait [#allocation3 + $0x2], 128 }
  0x2c   :  { %300 = vsyncadd [#allocation3 + $0x2], 4294967168 }
  0x2d   :  { %225 = vsyncmov [#allocation3] }
  0x30   :  { %s226_s1 = vpop.sfrf %225 }
  0x31   :  { %p289_p2 = scmp.ne.s32.totalorder %s226_s1, 0 }
  0x33   :  { %230 = shalt.err (%p289_p2)  }
  0x34   :  { %232 = vsyncmov [#allocation3 + $0x1] }
  0x37   :  { %s233_s3 = vpop.sfrf %232 }
  0x38   :  { %p290_p3 = scmp.ne.s32.totalorder %s233_s3, 0 }
  0x3a   :  { %237 = shalt.err (%p290_p3)  }
  0x3b   :  { %239 = vsyncmov [#allocation3 + $0x2] }
  0x3e   :  { %s240_s10 = vpop.sfrf %239 }
  0x3f   :  { %p291_p4 = scmp.ne.s32.totalorder %s240_s10, 0 }
  0x41   :  { %244 = shalt.err (%p291_p4)  }
  0x42   :  { %246 = vsyncmov [#allocation3 + $0x3] }
  0x45   :  { %s247_s4 = vpop.sfrf %246 }
  0x46   :  { %p292_p5 = scmp.ne.s32.totalorder %s247_s4, 0 }
  0x48   :  { %251 = shalt.err (%p292_p5)  }

// kernel: delay_fifo_forward_steps.5
= control target key start
LH: loop header
LB: loop body
LE: loop exit
PB: predicated region body
PF: predicated region fallthrough
CT: control target
= control target key end

     0   :  { %s377_s0 = inlined_call_operand.<no memory space> [shape: s32[1], index: 0, kind: input, shape index: {}]   ;;  %s378_s1 = inlined_call_operand.vmem [shape: f32[3,8], index: 1, kind: input, shape index: {}]   ;;  %s379_s3 = inlined_call_operand.vmem [shape: f32[3,8], index: 3, kind: output, shape index: {0}]   ;;  %s380_s4 = inlined_call_operand.vmem [shape: f32[16,8], index: 4, kind: output, shape index: {1}, may-alias: {2,4}]   ;;  %s381_s2 = inlined_call_operand.vmem [shape: f32[16,8], index: 2, kind: input, shape index: {}, may-alias: {2,4}]  }
   0x1   :  { %p16_p0 = scmp.lt.s32.totalorder %s377_s0, 13 }
   0x3   :  { %s17_s19 = scalar_select %p16_p0, %s377_s0, 13 }
   0x5   :  { %s18_s22 = ssub.s32 %s377_s0, %s17_s19  ;;  %s19_s25 = scalar_lea.vmem %s381_s2, %s17_s19 }
   0x6   :  { %v38_v0 = vld [vmem:[%s19_s25] sm:$0x7] }
   0x7   :  { %39 = vst [vmem:[#allocation2] sm:$0x7] %v38_v0 }
   0x8   :  { %65 = vsyncadd [#allocation3], 48  ;;  %p309_p1 = scmp.le.s32.totalorder %s18_s22, 0 }
   0xa   :  { %69 = sbr.rel (%p309_p1) target bundleno = 20 (0x14), region = 43 }
   0xf   :  { %v90_v1 = vld [vmem:[%s381_s2] sm:$0x7] }
  0x10   :  { %91 = vst [vmem:[#allocation2 + $0x3] sm:$0x7] %v90_v1 }
  0x11   :  { %117 = vsyncadd [#allocation3 + $0x1], 48 }
  0x12   :  { %315 = dma.done.wait [#allocation3 + $0x1], 48 }
  0x13   :  { %316 = vsyncadd [#allocation3 + $0x1], 4294967248 }
  0x14 PF:  { %317 = dma.done.wait [#allocation3], 48 }
  0x15   :  { %318 = vsyncadd [#allocation3], 4294967248  ;;  %vm126_vm0 = vcmask 59392   ;;  %s124_s0 = scalar_lea.vmem [#allocation2], %s18_s22  ;;  %v128_v3 = vld [vmem:[%s378_s1] sm:$0x7]  ;;  %s130_s7 = scalar_lea.vmem %s380_s4, %s17_s19 }
  0x17   :  { %v125_v2 = vld [vmem:[%s124_s0] sm:$0x7] }
  0x18   :  { %129 = vst.msk [vmem:[%s124_s0] sm:$0x7] %vm126_vm0, %v128_v3  ;;  %127 = vst.msk [vmem:[%s379_s3] sm:$0x7] %vm126_vm0, %v125_v2 }
  0x1f   :  { %v150_v4 = vld [vmem:[#allocation2] sm:$0x7] }
  0x20   :  { %151 = vst [vmem:[%s130_s7] sm:$0x7] %v150_v4 }
  0x21   :  { %177 = vsyncadd [#allocation3 + $0x2], 48  ;;  %180 = sbr.rel (%p309_p1) target bundleno = 43 (0x2b), region = 107 }
  0x26   :  { %v201_v5 = vld [vmem:[#allocation2 + $0x3] sm:$0x7] }
  0x27   :  { %202 = vst [vmem:[%s380_s4] sm:$0x7] %v201_v5 }
  0x28   :  { %228 = vsyncadd [#allocation3 + $0x3], 48 }
  0x29   :  { %319 = dma.done.wait [#allocation3 + $0x3], 48 }
  0x2a   :  { %320 = vsyncadd [#allocation3 + $0x3], 4294967248 }
  0x2b PF:  { %321 = dma.done.wait [#allocation3 + $0x2], 48 }
  0x2c   :  { %322 = vsyncadd [#allocation3 + $0x2], 4294967248 }
  0x2d   :  { %237 = vsyncmov [#allocation3] }
  0x30   :  { %s238_s1 = vpop.sfrf %237 }
  0x31   :  { %p311_p2 = scmp.ne.s32.totalorder %s238_s1, 0 }
  0x33   :  { %242 = shalt.err (%p311_p2)  }
  0x34   :  { %244 = vsyncmov [#allocation3 + $0x1] }
  0x37   :  { %s245_s3 = vpop.sfrf %244 }
  0x38   :  { %p312_p3 = scmp.ne.s32.totalorder %s245_s3, 0 }
  0x3a   :  { %249 = shalt.err (%p312_p3)  }
  0x3b   :  { %251 = vsyncmov [#allocation3 + $0x2] }
  0x3e   :  { %s252_s10 = vpop.sfrf %251 }
  0x3f   :  { %p313_p4 = scmp.ne.s32.totalorder %s252_s10, 0 }
  0x41   :  { %256 = shalt.err (%p313_p4)  }
  0x42   :  { %258 = vsyncmov [#allocation3 + $0x3] }
  0x45   :  { %s259_s4 = vpop.sfrf %258 }
  0x46   :  { %p314_p5 = scmp.ne.s32.totalorder %s259_s4, 0 }
  0x48   :  { %263 = shalt.err (%p314_p5)  }

</bundles_post_ra>
